<compile_context>
chip_gen: v7x
topology: tpu7x:2x2x1
jax: 0.10.0
libtpu: 0.0.40
codegen_flags: <defaults>
</compile_context>

<pallas_src>
import functools

import jax
import jax.numpy as jnp
import numpy as np
from jax.experimental import pallas as pl
from jax.experimental.pallas import tpu as pltpu


# ----------------------------------------------------------------------------
# Pallas kernel: fused (conv-as-one-matmul -> BN shift -> SiLU)
# ----------------------------------------------------------------------------
def _conv_bn_silu_kernel(col_ref, w_ref, o_ref, *, apply_act):
    # col_ref: (B_TILE, K, npix)    bf16  lane-dense im2col slab (+ ones row)
    # w_ref:   (Cout, K)            bf16  BN-scale-folded weights (+ shift col)
    # o_ref:   (B_TILE, Cout, npix) out   channel-major, lane-dense store
    w = w_ref[...]
    b_tile = col_ref.shape[0]
    for b in range(b_tile):                      # static unroll over images
        # One MXU matmul per image; channel-major (Cout, npix) f32 result.
        y = jnp.dot(w, col_ref[b], preferred_element_type=jnp.float32)
        if apply_act:
            # SiLU: y * sigmoid(y).  exp rides the EUP slot; exact reciprocal
            # (approx=False) — the epilogue is only ~2 vregs.
            y = y * pl.reciprocal(1.0 + jnp.exp(-y), approx=False)
        o_ref[b] = y.astype(o_ref.dtype)


# ----------------------------------------------------------------------------
# ConvLayer forward (layout glue in plain JAX, hot path in Pallas)
# ----------------------------------------------------------------------------
def conv_layer_forward(x_nchw, params, *, kernel_size, stride, groups=1,
                       eps=1e-5, use_norm=True, use_act=True,
                       out_dtype=jnp.float32, b_tile=None):
    """x_nchw: (N, Cin, H, W) f32.  Returns (N, Cout, H_out, W_out) out_dtype."""
    assert groups == 1, "groups != 1 not supported"   # TODO(synk) above
    kh, kw = kernel_size
    sh, sw = stride
    ph, pw = (kh - 1) // 2, (kw - 1) // 2             # PyTorch autopad (odd k)

    w = params["conv_weight"]                         # (Cout, Cin, KH, KW)
    n, cin, h, wd = x_nchw.shape
    cout = w.shape[0]
    h_out = (h + 2 * ph - kh) // sh + 1
    w_out = (wd + 2 * pw - kw) // sw + 1
    npix = h_out * w_out
    k_dim = kh * kw * cin + 1                         # +1: bias row for BN shift

    # --- fold eval-mode BatchNorm (and optional conv bias) ------------------
    if use_norm:
        gamma, beta = params["bn_weight"], params["bn_bias"]
        mean, var = params["bn_running_mean"], params["bn_running_var"]
        scale = gamma / jnp.sqrt(var + eps)                       # (Cout,)
        shift = beta - mean * scale                               # (Cout,)
    else:
        scale = jnp.ones((cout,), jnp.float32)
        shift = jnp.zeros((cout,), jnp.float32)
    if params.get("conv_bias", None) is not None:
        shift = shift + params["conv_bias"] * scale

    # Weights: scale folded into columns, shift appended as the bias column.
    # K ordering = (kh, kw, cin), matching the im2col slab below.
    w_folded = w * scale[:, None, None, None]                     # (Cout,Cin,KH,KW)
    w_k = jnp.transpose(w_folded, (0, 2, 3, 1)).reshape(cout, kh * kw * cin)
    w_k = jnp.concatenate([w_k, shift[:, None]], axis=1).astype(jnp.bfloat16)

    # --- lane-dense im2col slab (wrapper side, tiny) -------------------------
    x = jnp.transpose(x_nchw, (0, 2, 3, 1)).astype(jnp.bfloat16)   # NHWC
    xp = jnp.pad(x, ((0, 0), (ph, ph), (pw, pw), (0, 0)))
    taps = []
    for i in range(kh):
        for j in range(kw):
            taps.append(xp[:, i:i + (h_out - 1) * sh + 1:sh,
                           j:j + (w_out - 1) * sw + 1:sw, :])      # (N,h_o,w_o,Cin)
    col = jnp.stack(taps, axis=3).reshape(n, npix, kh * kw * cin)  # (N,npix,K-1)
    col = jnp.concatenate(
        [col, jnp.ones((n, npix, 1), jnp.bfloat16)], axis=-1)      # bias row
    col = jnp.transpose(col, (0, 2, 1))                            # (N, K, npix)

    # --- batch tiling: B_TILE images per grid step ---------------------------
    if b_tile is None:
        b_tile = min(n, 8)
    g = pl.cdiv(n, b_tile)
    n_pad = g * b_tile
    if n_pad != n:
        col = jnp.pad(col, ((0, n_pad - n), (0, 0), (0, 0)))

    kernel = functools.partial(_conv_bn_silu_kernel, apply_act=use_act)

    out = pl.pallas_call(
        kernel,
        out_shape=jax.ShapeDtypeStruct((n_pad, cout, npix), out_dtype),
        grid_spec=pltpu.PrefetchScalarGridSpec(
            num_scalar_prefetch=0,
            grid=(g,),
            in_specs=[
                pl.BlockSpec((b_tile, k_dim, npix), lambda b: (b, 0, 0)),
                pl.BlockSpec((cout, k_dim), lambda b: (0, 0)),
            ],
            out_specs=pl.BlockSpec((b_tile, cout, npix), lambda b: (b, 0, 0)),
        ),
        compiler_params=pltpu.CompilerParams(
            dimension_semantics=("parallel",),
            vmem_limit_bytes=32 * 1024 * 1024),   # safe on v5e/v6e/v7x
    )(col, w_k)

    # (N, Cout, npix) -> (N, Cout, H_out, W_out): free reshape, no transpose.
    return out[:n].reshape(n, cout, h_out, w_out)


# ----------------------------------------------------------------------------
# Reference (plain JAX, f32) for sanity checking
# ----------------------------------------------------------------------------
def conv_layer_reference(x_nchw, params, *, kernel_size, stride, eps=1e-5):
    kh, kw = kernel_size
    ph, pw = (kh - 1) // 2, (kw - 1) // 2
    out = jax.lax.conv_general_dilated(
        x_nchw, params["conv_weight"],
        window_strides=stride,
        padding=((ph, ph), (pw, pw)),
        dimension_numbers=("NCHW", "OIHW", "NCHW"),
    )
    gamma = params["bn_weight"].reshape(1, -1, 1, 1)
    beta = params["bn_bias"].reshape(1, -1, 1, 1)
    mean = params["bn_running_mean"].reshape(1, -1, 1, 1)
    var = params["bn_running_var"].reshape(1, -1, 1, 1)
    y = (out - mean) / jnp.sqrt(var + eps) * gamma + beta
    return y * jax.nn.sigmoid(y)


# ----------------------------------------------------------------------------
if __name__ == "__main__":
    # Module config: ConvLayer(in_channels=4, out_channels=8, kernel_size=3,
    #                          stride=1, groups=1, bias=False,
    #                          use_norm=True, use_act=True)
    in_channels, out_channels = 4, 8
    kernel_size, stride = (3, 3), (1, 1)
    N, H, W = 2, 16, 16

    key = jax.random.PRNGKey(0)
    k_x, k_w, k_g, k_b, k_m, k_v = jax.random.split(key, 6)

    x = jax.random.normal(k_x, (N, in_channels, H, W), dtype=jnp.float32)

    params = {
        "conv_weight": 0.1 * jax.random.normal(
            k_w, (out_channels, in_channels, *kernel_size), dtype=jnp.float32),
        "bn_weight": 1.0 + 0.1 * jax.random.normal(
            k_g, (out_channels,), dtype=jnp.float32),
        "bn_bias": 0.1 * jax.random.normal(
            k_b, (out_channels,), dtype=jnp.float32),
        "bn_running_mean": 0.05 * jax.random.normal(
            k_m, (out_channels,), dtype=jnp.float32),
        "bn_running_var": 1.0 + 0.1 * jax.random.uniform(
            k_v, (out_channels,), dtype=jnp.float32),
    }

    fwd = jax.jit(functools.partial(conv_layer_forward,
                                    kernel_size=kernel_size, stride=stride))
    out = jax.block_until_ready(fwd(x, params))

    ref = conv_layer_reference(x, params,
                               kernel_size=kernel_size, stride=stride)
    # Matmul operands (and the folded BN shift) are bf16 with f32 MXU
    # accumulation, so expect ~1e-3..1e-2 absolute deviation from pure f32.
    np.testing.assert_allclose(np.asarray(out), np.asarray(ref),
                               rtol=3e-2, atol=3e-2)

    assert out.shape == (N, out_channels, H, W)
    print("KERNEL_OK")
</pallas_src>

<mosaic_0001>
module attributes {stable_mosaic.version = 11 : i64} {
  func.func @_conv_bn_silu_kernel(%arg0: i32, %arg1: memref<2x37x256xbf16, #tpu.memory_space<vmem>>, %arg2: memref<8x37xbf16, #tpu.memory_space<vmem>>, %arg3: memref<2x8x256xf32, #tpu.memory_space<vmem>>) attributes {dimension_semantics = [#tpu.dimension_semantics<parallel>], iteration_bounds = array<i64: 1>, scalar_prefetch = 0 : i64, scratch_operands = 0 : i64, tpu.core_type = #tpu.core_type<tc>, window_params = [{transform_indices = @transform_0, window_bounds = array<i64: 2, 37, 256>}, {pipeline_mode = #tpu.pipeline_mode<synchronous>, transform_indices = @transform_1, window_bounds = array<i64: 8, 37>}, {transform_indices = @transform_2, window_bounds = array<i64: 2, 8, 256>}]} {
    %c0 = arith.constant 0 : index
    %c0_0 = arith.constant 0 : index
    %0 = vector.load %arg2[%c0, %c0_0] : memref<8x37xbf16, #tpu.memory_space<vmem>>, vector<8x37xbf16>
    %c0_1 = arith.constant 0 : index
    %c0_2 = arith.constant 0 : index
    %c0_3 = arith.constant 0 : index
    %1 = vector.load %arg1[%c0_1, %c0_2, %c0_3] : memref<2x37x256xbf16, #tpu.memory_space<vmem>>, vector<1x37x256xbf16>
    %2 = vector.shape_cast %1 : vector<1x37x256xbf16> to vector<37x256xbf16>
    %cst = arith.constant dense<0.000000e+00> : vector<8x256xf32>
    %3 = tpu.matmul %0, %2, %cst {dimension_numbers = #tpu.dot_dimension_numbers<[1], [0], [0], [1], [0, 0, 1, 1], [], []>} : vector<8x37xbf16>, vector<37x256xbf16>, vector<8x256xf32> -> vector<8x256xf32>
    %cst_4 = arith.constant 0.000000e+00 : f32
    %4 = vector.broadcast %cst_4 : f32 to vector<8x256xf32>
    %5 = arith.subf %4, %3 : vector<8x256xf32>
    %6 = math.exp %5 : vector<8x256xf32>
    %cst_5 = arith.constant 1.000000e+00 : f32
    %7 = vector.broadcast %cst_5 : f32 to vector<8x256xf32>
    %8 = arith.addf %7, %6 : vector<8x256xf32>
    %9 = tpu.reciprocal %8 : vector<8x256xf32> -> vector<8x256xf32>
    %10 = arith.mulf %3, %9 : vector<8x256xf32>
    %c0_6 = arith.constant 0 : index
    %c0_7 = arith.constant 0 : index
    %c0_8 = arith.constant 0 : index
    %11 = vector.load %arg3[%c0_6, %c0_7, %c0_8] : memref<2x8x256xf32, #tpu.memory_space<vmem>>, vector<1x8x256xf32>
    %12 = vector.shape_cast %11 : vector<1x8x256xf32> to vector<8x256xf32>
    %13 = vector.shape_cast %10 : vector<8x256xf32> to vector<1x8x256xf32>
    tpu.vector_store %arg3[%c0_6, %c0_7, %c0_8], %13 {strides = array<i32>} : memref<2x8x256xf32, #tpu.memory_space<vmem>>, vector<1x8x256xf32>,
    %c1 = arith.constant 1 : index
    %c0_9 = arith.constant 0 : index
    %c0_10 = arith.constant 0 : index
    %14 = vector.load %arg1[%c1, %c0_9, %c0_10] : memref<2x37x256xbf16, #tpu.memory_space<vmem>>, vector<1x37x256xbf16>
    %15 = vector.shape_cast %14 : vector<1x37x256xbf16> to vector<37x256xbf16>
    %cst_11 = arith.constant dense<0.000000e+00> : vector<8x256xf32>
    %16 = tpu.matmul %0, %15, %cst_11 {dimension_numbers = #tpu.dot_dimension_numbers<[1], [0], [0], [1], [0, 0, 1, 1], [], []>} : vector<8x37xbf16>, vector<37x256xbf16>, vector<8x256xf32> -> vector<8x256xf32>
    %cst_12 = arith.constant 0.000000e+00 : f32
    %17 = vector.broadcast %cst_12 : f32 to vector<8x256xf32>
    %18 = arith.subf %17, %16 : vector<8x256xf32>
    %19 = math.exp %18 : vector<8x256xf32>
    %cst_13 = arith.constant 1.000000e+00 : f32
    %20 = vector.broadcast %cst_13 : f32 to vector<8x256xf32>
    %21 = arith.addf %20, %19 : vector<8x256xf32>
    %22 = tpu.reciprocal %21 : vector<8x256xf32> -> vector<8x256xf32>
    %23 = arith.mulf %16, %22 : vector<8x256xf32>
    %c1_14 = arith.constant 1 : index
    %c0_15 = arith.constant 0 : index
    %c0_16 = arith.constant 0 : index
    %24 = vector.load %arg3[%c1_14, %c0_15, %c0_16] : memref<2x8x256xf32, #tpu.memory_space<vmem>>, vector<1x8x256xf32>
    %25 = vector.shape_cast %24 : vector<1x8x256xf32> to vector<8x256xf32>
    %26 = vector.shape_cast %23 : vector<8x256xf32> to vector<1x8x256xf32>
    tpu.vector_store %arg3[%c1_14, %c0_15, %c0_16], %26 {strides = array<i32>} : memref<2x8x256xf32, #tpu.memory_space<vmem>>, vector<1x8x256xf32>,
    return
  }
  func.func @transform_0(%arg0: i32) -> (i32, i32, i32) {
    %c0_i32 = arith.constant 0 : i32
    %c0_i32_0 = arith.constant 0 : i32
    %c0_i32_1 = arith.constant 0 : i32
    return %arg0, %c0_i32, %c0_i32_0 : i32, i32, i32
  }
  func.func @transform_1(%arg0: i32) -> (i32, i32) {
    %c0_i32 = arith.constant 0 : i32
    %c0_i32_0 = arith.constant 0 : i32
    %c0_i32_1 = arith.constant 0 : i32
    return %c0_i32, %c0_i32_0 : i32, i32
  }
  func.func @transform_2(%arg0: i32) -> (i32, i32, i32) {
    %c0_i32 = arith.constant 0 : i32
    %c0_i32_0 = arith.constant 0 : i32
    %c0_i32_1 = arith.constant 0 : i32
    return %arg0, %c0_i32, %c0_i32_0 : i32, i32, i32
  }
}

</mosaic_0001>

<bundles_post_ra>
// kernel: conv_layer_forward.1
= control target key start
LH: loop header
LB: loop body
LE: loop exit
PB: predicated region body
PF: predicated region fallthrough
CT: control target
= control target key end

     0   :  { %vm47_vm0 = vcmask 1041408   ;;  %v264_v1 = vmov 0   ;;  %vm48_vm1 = vcmask 1042432   ;;  %v265_v3 = vmov 65535   ;;  %s326_s0 = inlined_call_operand.vmem [shape: bf16[2,37,256], index: 0, kind: input, shape index: {}]   ;;  %s327_s1 = inlined_call_operand.vmem [shape: bf16[8,37], index: 1, kind: input, shape index: {}]   ;;  %s328_s2 = inlined_call_operand.vmem [shape: f32[2,8,256], index: 2, kind: output, shape index: {}]  }
   0x1   :  { %v232_v0 = vld [vmem:[%s326_s0 + $0x4] ss:$8 sps:$4 sm:$0xff]   ;;  %89 = vmatprep.mubr.bf16.mxu0 %v264_v1  ;;  %181 = vmatprep.mubr.bf16.mxu1 %v264_v1  ;;  %v49_v4 = vsel %vm47_vm0, 4294967295, %v265_v3  ;;  %v236_v5 = vld [vmem:[%s326_s0] ss:$8 sps:$4 sm:$0xff]   ;;  %vm43_vm2 = vcmask 302080  }
   0x2   :  { %v234_v2 = vld [vmem:[%s326_s0 + $0x2c] ss:$8 sps:$4 sm:$0xff]   ;;  %57 = vmatprep.subr.bf16.mxu0 %v232_v0  ;;  %v237_v6 = vld [vmem:[%s326_s0 + $0x28] ss:$8 sps:$4 sm:$0xff]   ;;  %v240_v8 = vld [vmem:[%s326_s0 + $0x3c] ss:$8 sps:$4 sm:$0xff]  }
   0x3   :  { %149 = vmatprep.subr.bf16.mxu1 %v234_v2  ;;  %v238_v7 = vld [vmem:[%s326_s0 + $0x14] ss:$8 sps:$4 sm:$0xff]   ;;  %58 = vmatpush1.bf16.msra.mxu0 %v236_v5  ;;  %v242_v9 = vld [vmem:[%s326_s0 + $0x10] ss:$8 sps:$4 sm:$0xff]   ;;  %v50_v10 = vsel %vm48_vm1, %v49_v4, 0 }
   0x4   :  { %150 = vmatpush1.bf16.msra.mxu1 %v237_v6  ;;  %59 = vmatprep.subr.bf16.mxu0 %v238_v7  ;;  %v243_v11 = vld [vmem:[%s326_s0 + $0x38] ss:$8 sps:$4 sm:$0xff]   ;;  %v220_v13 = vld [vmem:[%s326_s0 + $0x48] sm:$0x77] }
   0x5   :  { %v17_v12 = vld [vmem:[%s326_s0 + $0x20] sm:$0x77]  ;;  %151 = vmatprep.subr.bf16.mxu1 %v240_v8  ;;  %v226_v15 = vcombine.high %v220_v13, %v220_v13  ;;  %v225_v17 = vcombine.low %v220_v13, %v220_v13 }
   0x6   :  { %v214_v14 = vcombine.high %v17_v12, %v17_v12  ;;  %v213_v16 = vcombine.low %v17_v12, %v17_v12  ;;  %v12_v22 = vld [vmem:[%s327_s1] sm:$0xf] }
   0x7   :  { %60 = vmatpush1.bf16.msra.mxu0 %v242_v9  ;;  %v147_v19 = vand.u32 %v226_v15, %v50_v10  ;;  %v144_v21 = vand.u32 %v225_v17, %v50_v10 }
   0x8   :  { %152 = vmatpush1.bf16.msra.mxu1 %v243_v11  ;;  %v55_v18 = vand.u32 %v214_v14, %v50_v10  ;;  %v52_v20 = vand.u32 %v213_v16, %v50_v10 }
   0x9   :  { %153 = vmatprep.subr.bf16.mxu1 %v147_v19 }
   0xa   :  { %61 = vmatprep.subr.bf16.mxu0 %v55_v18 }
   0xb   :  { %62 = vmatpush1.bf16.msra.mxu0 %v52_v20 }
   0xc   :  { %154 = vmatpush1.bf16.msra.mxu1 %v144_v21 }
   0xe   :  { %215 = vmatmul.mubr.msk.bf16.vlgmr.msra.gmra.mrb[0].mxu0 %vm43_vm2, %v12_v22 }
   0xf   :  { %227 = vmatmul.mubr.msk.bf16.vlgmr.msra.gmra.mrb[0].mxu1 %vm43_vm2, %v12_v22 }
  0xe1   :  { %v91_v23 = vpop.f32.mrb[0].mxu0 }
  0xe2   :  { %v183_v24 = vpop.f32.mrb[0].mxu1  ;;  %v98_v25 = vsub.f32 0.0, %v91_v23  ;;  %v93_v27 = vpop.f32.mrb[1].mxu0 }
  0xe3   :  { %v190_v26 = vsub.f32 0.0, %v183_v24  ;;  %v185_v28 = vpop.f32.mrb[1].mxu1  ;;  %v99_v29 = vsub.f32 0.0, %v93_v27  ;;  %v95_v31 = vpop.f32.mrb[2].mxu0 }
  0xe4   :  { %v191_v30 = vsub.f32 0.0, %v185_v28  ;;  %v187_v32 = vpop.f32.mrb[2].mxu1  ;;  %v100_v33 = vmul.f32 1.442695, %v98_v25  ;;  %v96_v35 = vpop.f32.mrb[3].mxu0 }
  0xe5   :  { %v192_v34 = vmul.f32 1.442695, %v190_v26  ;;  %v188_v36 = vpop.f32.mrb[3].mxu1  ;;  %v102_v37 = vmul.f32 1.442695, %v99_v29 }
  0xe6   :  { %v194_v38 = vmul.f32 1.442695, %v191_v30  ;;  %248 = vpow2.f32 %v100_v33 }
  0xe7   :  { %250 = vpow2.f32 %v192_v34 }
  0xe8   :  { %252 = vpow2.f32 %v102_v37 }
  0xe9   :  { %254 = vpow2.f32 %v194_v38 }
  0xf0   :  { %v249_v39 = vpop.eup %248 }
  0xf1   :  { %v251_v40 = vpop.eup %250  ;;  %v104_v41 = vadd.f32 1.0, %v249_v39 }
  0xf2   :  { %v253_v42 = vpop.eup %252  ;;  %v196_v43 = vadd.f32 1.0, %v251_v40 }
  0xf3   :  { %v255_v44 = vpop.eup %254  ;;  %256 = vrcp.f32 %v104_v41  ;;  %v105_v45 = vadd.f32 1.0, %v253_v42 }
  0xf4   :  { %258 = vrcp.f32 %v196_v43  ;;  %v197_v46 = vadd.f32 1.0, %v255_v44 }
  0xf5   :  { %260 = vrcp.f32 %v105_v45 }
  0xf6   :  { %262 = vrcp.f32 %v197_v46 }
  0xfd   :  { %v257_v47 = vpop.eup %256 }
  0xfe   :  { %v259_v48 = vpop.eup %258  ;;  %v108_v49 = vmul.f32 %v257_v47, %v91_v23 }
  0xff   :  { %v261_v50 = vpop.eup %260  ;;  %v200_v51 = vmul.f32 %v259_v48, %v183_v24 }
 0x100   :  { %v263_v52 = vpop.eup %262  ;;  %110 = vst [vmem:[%s328_s2] sm:$0xff] %v108_v49  ;;  %v109_v53 = vmul.f32 %v261_v50, %v93_v27 }
 0x101   :  { %228 = vst [vmem:[%s328_s2 + $0x10] sm:$0xff] %v200_v51  ;;  %v201_v54 = vmul.f32 %v263_v52, %v185_v28 }
 0x102   :  { %111 = vst [vmem:[%s328_s2 + $0x8] sm:$0xff] %v109_v53 }
 0x103   :  { %229 = vst [vmem:[%s328_s2 + $0x18] sm:$0xff] %v201_v54 }

</bundles_post_ra>
